<compile_context>
chip_gen: v7x
topology: tpu7x:2x2x1
jax: 0.10.0
libtpu: 0.0.40
codegen_flags: <defaults>
</compile_context>

<pallas_src>
import jax
import jax.numpy as jnp
from jax.experimental import pallas as pl
from jax.experimental.pallas import tpu as pltpu


_LANE = 512                        # lane-dense slab width (multiple of 128)
_BLOCK_BYTES = 2 * 1024 * 1024     # ~2 MiB per array per grid step
_VMEM_LIMIT = 32 * 1024 * 1024     # explicit scoped-VMEM budget (safe on v5e/v6e/v7x)


# ---------------------------------------------------------------------------
# Pallas kernels
# ---------------------------------------------------------------------------
def _relu_kernel(x_ref, o_ref):
    x = x_ref[...]
    o_ref[...] = jnp.maximum(x, jnp.zeros((), x.dtype))


def _relu_bwd_kernel(x_ref, g_ref, o_ref):
    # (input > 0) * gradwrtoutput
    o_ref[...] = jnp.where(
        x_ref[...] > 0, g_ref[...], jnp.zeros((), g_ref.dtype)
    ).astype(o_ref.dtype)


# ---------------------------------------------------------------------------
# Lane-dense tiled elementwise launcher
# ---------------------------------------------------------------------------
def _round_up(a, b):
    return ((a + b - 1) // b) * b


def _sublane(dtype):
    # vreg sublane packing: 8 rows (4-byte), 16 (2-byte), 32 (1-byte).
    return max(8, 32 // jnp.dtype(dtype).itemsize)


def _elementwise(kernel, *arrays, out_dtype=None):
    """Apply an elementwise Pallas kernel to same-shaped arrays.

    Arrays are viewed as a lane-dense (rows, 512) slab (all 128 lanes used,
    unmasked vst), tiled into ~2 MiB double-buffered blocks over a pipelined
    1-D "parallel" grid (shardable across v7x's two TensorCores). Padding /
    slicing is only emitted for genuinely ragged sizes (n % 512 != 0).
    """
    shape = arrays[0].shape
    out_dtype = arrays[0].dtype if out_dtype is None else out_dtype
    n = arrays[0].size

    rows = pl.cdiv(n, _LANE)
    n_pad = rows * _LANE
    ragged = n_pad != n

    slabs = []
    for a in arrays:
        flat = a.reshape(-1)
        if ragged:
            flat = jnp.pad(flat, (0, n_pad - n))
        slabs.append(flat.reshape(rows, _LANE))

    # Row tiling: dtype-aware sublane rounding, >= 2 grid steps when possible
    # (engages both TCs on v7x), capped by the per-array block-byte budget.
    # Partial last block is masked by Pallas (no row padding needed).
    sub = max(_sublane(a.dtype) for a in arrays)
    itemsize = max(jnp.dtype(a.dtype).itemsize for a in arrays)
    max_tile_rows = max(sub, (_BLOCK_BYTES // (_LANE * itemsize)) // sub * sub)
    if rows <= sub:
        tile_rows = rows  # block == full extent on this axis -> always valid
    else:
        tile_rows = min(max_tile_rows, _round_up(pl.cdiv(rows, 2), sub))
    grid = (pl.cdiv(rows, tile_rows),)

    spec = pl.BlockSpec((tile_rows, _LANE), lambda i: (i, 0))
    out = pl.pallas_call(
        kernel,
        out_shape=jax.ShapeDtypeStruct((rows, _LANE), out_dtype),
        grid=grid,
        in_specs=[spec] * len(slabs),
        out_specs=spec,
        compiler_params=pltpu.CompilerParams(
            dimension_semantics=("parallel",),
            vmem_limit_bytes=_VMEM_LIMIT,
        ),
    )(*slabs)

    if ragged:
        return out.reshape(-1)[:n].reshape(shape)
    return out.reshape(shape)


# ---------------------------------------------------------------------------
# Modules mirroring the PyTorch mini-framework
# ---------------------------------------------------------------------------
class Module:
    def forward(self, input):
        raise NotImplementedError

    def backward(self, gradwrtoutput):
        raise NotImplementedError

    def param(self):
        return []


class ReLU(Module):
    """IN: a tensor of image data (or any tensor); OUT: same-shaped tensor."""

    def __init__(self) -> None:
        self.input = None

    def forward(self, input):
        self.input = input
        return _elementwise(_relu_kernel, input)

    def backward(self, gradwrtoutput):
        # Gradient keeps the gradient's dtype (mixed-precision safe).
        return _elementwise(
            _relu_bwd_kernel, self.input, gradwrtoutput,
            out_dtype=gradwrtoutput.dtype,
        )


# ---------------------------------------------------------------------------
# Self-check
# ---------------------------------------------------------------------------
if __name__ == "__main__":
    key = jax.random.PRNGKey(0)
    kx, kg, kx2, kg2 = jax.random.split(key, 4)

    # Aligned case (n % 512 == 0): no wrapper pad/slice emitted.
    x = jax.random.normal(kx, (2, 4, 16, 16), dtype=jnp.float32)
    g = jax.random.normal(kg, (2, 4, 16, 16), dtype=jnp.float32)

    relu = ReLU()
    y = jax.block_until_ready(relu.forward(x))
    dx = jax.block_until_ready(relu.backward(g))

    y_ref = jnp.maximum(x, 0.0)
    dx_ref = jnp.where(x > 0, g, 0.0)
    assert y.shape == x.shape, y.shape
    assert jnp.allclose(y, y_ref, atol=0.0, rtol=0.0), float(jnp.max(jnp.abs(y - y_ref)))
    assert jnp.allclose(dx, dx_ref, atol=0.0, rtol=0.0), float(jnp.max(jnp.abs(dx - dx_ref)))

    # Ragged case (n % 512 != 0): exercises the pad / slice fallback path.
    x2 = jax.random.normal(kx2, (3, 5, 7, 11), dtype=jnp.float32)
    g2 = jax.random.normal(kg2, (3, 5, 7, 11), dtype=jnp.float32)

    relu2 = ReLU()
    y2 = jax.block_until_ready(relu2.forward(x2))
    dx2 = jax.block_until_ready(relu2.backward(g2))

    assert y2.shape == x2.shape, y2.shape
    assert jnp.allclose(y2, jnp.maximum(x2, 0.0), atol=0.0, rtol=0.0)
    assert jnp.allclose(dx2, jnp.where(x2 > 0, g2, 0.0), atol=0.0, rtol=0.0)

    print("KERNEL_OK")
</pallas_src>

<mosaic_0001>
module attributes {stable_mosaic.version = 11 : i64} {
  func.func @_relu_kernel(%arg0: i32, %arg1: memref<4x512xf32, #tpu.memory_space<vmem>>, %arg2: memref<4x512xf32, #tpu.memory_space<vmem>>) attributes {dimension_semantics = [#tpu.dimension_semantics<parallel>], iteration_bounds = array<i64: 1>, scalar_prefetch = 0 : i64, scratch_operands = 0 : i64, tpu.core_type = #tpu.core_type<tc>, window_params = [{transform_indices = @transform_0, window_bounds = array<i64: 4, 512>}, {transform_indices = @transform_1, window_bounds = array<i64: 4, 512>}]} {
    %c0 = arith.constant 0 : index
    %c0_0 = arith.constant 0 : index
    %0 = vector.load %arg1[%c0, %c0_0] : memref<4x512xf32, #tpu.memory_space<vmem>>, vector<4x512xf32>
    %cst = arith.constant 0.000000e+00 : f32
    %1 = vector.broadcast %cst : f32 to vector<4x512xf32>
    %2 = arith.maximumf %0, %1 : vector<4x512xf32>
    %c0_1 = arith.constant 0 : index
    %c0_2 = arith.constant 0 : index
    %3 = vector.load %arg2[%c0_1, %c0_2] : memref<4x512xf32, #tpu.memory_space<vmem>>, vector<4x512xf32>
    tpu.vector_store %arg2[%c0_1, %c0_2], %2 {strides = array<i32>} : memref<4x512xf32, #tpu.memory_space<vmem>>, vector<4x512xf32>,
    return
  }
  func.func @transform_0(%arg0: i32) -> (i32, i32) {
    %c0_i32 = arith.constant 0 : i32
    %c0_i32_0 = arith.constant 0 : i32
    return %arg0, %c0_i32 : i32, i32
  }
  func.func @transform_1(%arg0: i32) -> (i32, i32) {
    %c0_i32 = arith.constant 0 : i32
    %c0_i32_0 = arith.constant 0 : i32
    return %arg0, %c0_i32 : i32, i32
  }
}

</mosaic_0001>

<bundles_post_ra>
// kernel: tpu_custom_call.1
= control target key start
LH: loop header
LB: loop body
LE: loop exit
PB: predicated region body
PF: predicated region fallthrough
CT: control target
= control target key end

     0   :  { %6 = vsyncpa [#allocation3], 0  ;;  %s128_s0 = inlined_call_operand.hbm [shape: f32[4,512], index: 0, kind: input, shape index: {}]   ;;  %s129_s1 = inlined_call_operand.hbm [shape: f32[4,512], index: 1, kind: output, shape index: {}]  }
   0x1   :  { %7 = vsyncpa [#allocation4], 0  ;;  %s92_s6 = smov [#allocation2]   ;;  %s44_s10 = scalar_lea.hbm %s128_s0, 256 }
   0x2   :  { %s14_s7 = sshll.u32 %s92_s6, 4  ;;  %p45_p0 = scmp.ne.s32.totalorder %s128_s0, %s44_s10  ;;  %s15_s7 = int_to_ptr.vmem [resolvable:$true] %s14_s7 }
   0x3   :  { %p48_p1 = scmp.lt.u32.totalorder %s44_s10, %s128_s0 }
   0x5   :  { %p50_p2 = pnand %p48_p1, %p45_p0 }
   0x7   :  { %53 = shalt.err (!%p50_p2)
}
   0x8   :  { %s54_s15 = scalar_lea.vmem %s15_s7, 256  ;;  %p59_p4 = scmp.lt.s32.totalorder %s15_s7, %s15_s7 }
   0x9   :  { %p55_p3 = scmp.ne.s32.totalorder %s15_s7, %s54_s15  ;;  %p60_p5 = scmp.lt.s32.totalorder %s54_s15, %s54_s15 }
   0xb   :  { %p61_p6 = por %p60_p5, %p59_p4 }
   0xd   :  { %p62_p7 = pnand %p61_p6, %p55_p3 }
   0xf   :  { %65 = shalt.err (!%p62_p7)
}
  0x10   :  { %17 = dma.hbm_to_vmem [thread:$0]  %s128_s0, 256, %s15_s7, [#allocation3]  }
  0x11   :  { %88 = dma.done.wait [#allocation3], 256  }
  0x12   :  { %89 = vsyncadd [#allocation3], 4294967040  ;;  %s93_s18 = smov [#allocation5]   ;;  %v21_v0 = vld [vmem:[#allocation2] sm:$0xff]  ;;  %v22_v1 = vld [vmem:[#allocation2 + $0x8] sm:$0xff] }
  0x13   :  { %s33_s19 = sshll.u32 %s93_s18, 4  ;;  %v23_v2 = vmax.f32 %v21_v0, 0.0  ;;  %v24_v3 = vmax.f32 %v22_v1, 0.0  ;;  %s34_s19 = int_to_ptr.vmem [resolvable:$true] %s33_s19 }
  0x14   :  { %s66_s20 = scalar_lea.vmem %s34_s19, 256  ;;  %p71_p9 = scmp.lt.s32.totalorder %s34_s19, %s34_s19 }
  0x15   :  { %25 = vst [vmem:[#allocation5] sm:$0xff] %v23_v2  ;;  %26 = vst [vmem:[#allocation5 + $0x8] sm:$0xff] %v24_v3  ;;  %p67_p8 = scmp.ne.s32.totalorder %s34_s19, %s66_s20  ;;  %p72_p10 = scmp.lt.s32.totalorder %s66_s20, %s66_s20 }
  0x17   :  { %p73_p11 = por %p72_p10, %p71_p9 }
  0x19   :  { %p74_p12 = pnand %p73_p11, %p67_p8 }
  0x1b   :  { %77 = shalt.err (!%p74_p12)
}
  0x1c   :  { %s78_s22 = scalar_lea.hbm %s129_s1, 256 }
  0x1d   :  { %p79_p13 = scmp.ne.s32.totalorder %s129_s1, %s78_s22  ;;  %p82_p0 = scmp.lt.u32.totalorder %s78_s22, %s129_s1 }
  0x1f   :  { %p84_p1 = pnand %p82_p0, %p79_p13 }
  0x21   :  { %87 = shalt.err (!%p84_p1)
}
  0x22   :  { %36 = dma.vmem_to_hbm [thread:$0]  %s34_s19, 256, %s129_s1, [#allocation4]  }
  0x23   :  { %90 = dma.done.wait [#allocation4], 256  }
  0x24   :  { %91 = vsyncadd [#allocation4], 4294967040 }
  0x25   :  { %40 = vsyncpa [#allocation3], 1 }
  0x26   :  { %41 = vsyncpa [#allocation4], 1 }

</bundles_post_ra>
